<compile_context>
chip_gen: v5e
topology: v5e:2x2
jax: 0.10.0
libtpu: 0.0.40
codegen_flags: <defaults>
</compile_context>

<pallas_src>
import jax
import jax.numpy as jnp
from jax.experimental import pallas as pl
from jax.experimental.pallas import tpu as pltpu


def lstm_kernel(x_ref, wih_ref, whh_ref, b_ref, wout_ref, bout_ref, out_ref):
    """Fused LSTM + linear head, single invocation, fully VMEM-resident.

    x_ref   : (S*Bp, F)  time-major input, batch padded to Bp (multiple of 8)
    wih_ref : (F, 4H)    fused input weights (transposed), gate order i|f|g|o on lanes
    whh_ref : (H, 4H)    fused recurrent weights (transposed), same lane layout
    b_ref   : (1, 4H)    fused bias (b_ih + b_hh)
    wout_ref: (H, P)     output head weight (transposed)
    bout_ref: (1, P)     output head bias
    out_ref : (Bp, P)
    """
    Bp = out_ref.shape[0]
    H = whh_ref.shape[0]
    S = x_ref.shape[0] // Bp

    # Hoisted input projection over ALL timesteps: one matmul + one fused bias add.
    # Result (S*Bp, 4H) is already in the fused-gate lane layout, so the per-step
    # add inside the recurrence is one full (8,128) tile op.
    xg_all = (jnp.dot(x_ref[...], wih_ref[...],
                      preferred_element_type=jnp.float32,
                      precision=jax.lax.Precision.DEFAULT)
              + b_ref[...])

    whh = whh_ref[...]                                  # loop-invariant (H, 4H)

    def cell_update(pre, c):
        # pre: (Bp, 4H) fused pre-activation. Sigmoid over the whole 128-lane tile
        # (one EUP pass), tanh only on the 32-lane g chunk.
        sig = jax.nn.sigmoid(pre)
        i = sig[:, 0 * H:1 * H]
        f = sig[:, 1 * H:2 * H]
        g = jnp.tanh(pre[:, 2 * H:3 * H])
        o = sig[:, 3 * H:4 * H]
        c_new = f * c + i * g
        h_new = o * jnp.tanh(c_new)
        return h_new, c_new

    # ---- t = 0 peeled: h0 = c0 = 0 -> no recurrent matmul, no f*c term. ----
    pre0 = xg_all[0:Bp, :]
    sig0 = jax.nn.sigmoid(pre0)
    i0 = sig0[:, 0 * H:1 * H]
    g0 = jnp.tanh(pre0[:, 2 * H:3 * H])
    o0 = sig0[:, 3 * H:4 * H]
    c = i0 * g0
    h = o0 * jnp.tanh(c)

    # ---- t = 1 .. S-1: exactly ONE fused recurrent matmul per step on the
    # serial critical path (static, fully unrolled loop; S is small). ----
    for t in range(1, S):
        r0 = t * Bp
        pre = xg_all[r0:r0 + Bp, :] + jnp.dot(
            h, whh,
            preferred_element_type=jnp.float32,
            precision=jax.lax.Precision.DEFAULT)
        h, c = cell_update(pre, c)

    # Linear head applied exactly once, to the final hidden state.
    # (P=4 -> masked store; negligible at a single store. Pad P to 128 if it grows.)
    out_ref[...] = (jnp.dot(h, wout_ref[...], preferred_element_type=jnp.float32)
                    + bout_ref[...]).astype(out_ref.dtype)


def prepare_lstm_params(w_ih, w_hh, b_ih, b_hh, w_out, b_out):
    """One-time weight re-layout, hoisted out of the per-call forward path.

    w_ih: (4H, F), w_hh: (4H, H), b_ih/b_hh: (4H,), w_out: (P, H), b_out: (P,)
    PyTorch gate order (i, f, g, o) along the 4H axis is preserved by the transpose.
    """
    H = w_hh.shape[1]
    P = w_out.shape[0]
    wih_f = jnp.transpose(w_ih).astype(jnp.float32)      # (F, 4H)
    whh_f = jnp.transpose(w_hh).astype(jnp.float32)      # (H, 4H)
    b_f = (b_ih + b_hh).reshape(1, 4 * H).astype(jnp.float32)
    wout_T = jnp.transpose(w_out).astype(jnp.float32)    # (H, P)
    bout = b_out.reshape(1, P).astype(jnp.float32)
    return wih_f, whh_f, b_f, wout_T, bout


@jax.jit
def lstm_forward_pallas(x, params):
    """x: (batch, seq, features) float32 -> (batch, forecast_steps) float32."""
    wih_f, whh_f, b_f, wout_T, bout = params
    B, S, F = x.shape
    P = wout_T.shape[1]

    # Pad batch up to a full 8-sublane vreg; padded rows are mathematically inert
    # (h0 = c0 = 0) and sliced off at the end.
    Bp = max(8, ((B + 7) // 8) * 8)
    x_pad = jnp.zeros((Bp, S, F), jnp.float32).at[:B].set(x.astype(jnp.float32))
    x_tm = jnp.transpose(x_pad, (1, 0, 2)).reshape(S * Bp, F)  # time-major, flattened

    vmem = pl.BlockSpec(memory_space=pltpu.MemorySpace.VMEM)
    out_full = pl.pallas_call(
        lstm_kernel,
        out_shape=jax.ShapeDtypeStruct((Bp, P), jnp.float32),
        in_specs=[vmem] * 6,
        out_specs=vmem,
    )(x_tm, wih_f, whh_f, b_f, wout_T, bout)

    return out_full[:B]


def lstm_forward_ref(x, w_ih, w_hh, b_ih, b_hh, w_out, b_out):
    """Pure-JAX reference (same math as torch.nn.LSTM + Linear)."""
    B, S, F = x.shape
    H = w_hh.shape[1]

    def step(carry, x_t):
        h, c = carry
        gates = x_t @ w_ih.T + h @ w_hh.T + b_ih + b_hh
        i = jax.nn.sigmoid(gates[:, 0 * H:1 * H])
        f = jax.nn.sigmoid(gates[:, 1 * H:2 * H])
        g = jnp.tanh(gates[:, 2 * H:3 * H])
        o = jax.nn.sigmoid(gates[:, 3 * H:4 * H])
        c_new = f * c + i * g
        h_new = o * jnp.tanh(c_new)
        return (h_new, c_new), None

    h0 = jnp.zeros((B, H), jnp.float32)
    c0 = jnp.zeros((B, H), jnp.float32)
    (h_fin, _), _ = jax.lax.scan(step, (h0, c0), jnp.transpose(x, (1, 0, 2)))
    return h_fin @ w_out.T + b_out


if __name__ == "__main__":
    # Shapes consistent with the module: x (batch, seq, num_features) -> (batch, forecast_steps)
    batch, seq, num_features = 2, 8, 4
    hidden_units, forecast_steps = 32, 4

    key = jax.random.PRNGKey(0)
    ks = jax.random.split(key, 7)
    scale = 1.0 / jnp.sqrt(hidden_units)  # matches PyTorch LSTM/Linear init range

    x = jax.random.normal(ks[0], (batch, seq, num_features), jnp.float32)
    w_ih = jax.random.uniform(ks[1], (4 * hidden_units, num_features),
                              jnp.float32, -scale, scale)
    w_hh = jax.random.uniform(ks[2], (4 * hidden_units, hidden_units),
                              jnp.float32, -scale, scale)
    b_ih = jax.random.uniform(ks[3], (4 * hidden_units,), jnp.float32, -scale, scale)
    b_hh = jax.random.uniform(ks[4], (4 * hidden_units,), jnp.float32, -scale, scale)
    w_out = jax.random.uniform(ks[5], (forecast_steps, hidden_units),
                               jnp.float32, -scale, scale)
    b_out = jax.random.uniform(ks[6], (forecast_steps,), jnp.float32, -scale, scale)

    # One-time weight layout (init-time work, not on the per-call forward path).
    params = prepare_lstm_params(w_ih, w_hh, b_ih, b_hh, w_out, b_out)

    out = lstm_forward_pallas(x, params)
    out = jax.block_until_ready(out)

    ref = lstm_forward_ref(x, w_ih, w_hh, b_ih, b_hh, w_out, b_out)
    assert out.shape == (batch, forecast_steps)
    assert jnp.allclose(out, ref, atol=1e-5, rtol=1e-5), (out, ref)

    print("KERNEL_OK")
</pallas_src>

<mosaic_0001>
module attributes {stable_mosaic.version = 11 : i64} {
  func.func @lstm_kernel(%arg0: memref<64x4xf32, #tpu.memory_space<vmem>>, %arg1: memref<4x128xf32, #tpu.memory_space<vmem>>, %arg2: memref<32x128xf32, #tpu.memory_space<vmem>>, %arg3: memref<1x128xf32, #tpu.memory_space<vmem>>, %arg4: memref<32x4xf32, #tpu.memory_space<vmem>>, %arg5: memref<1x4xf32, #tpu.memory_space<vmem>>, %arg6: memref<8x4xf32, #tpu.memory_space<vmem>>) attributes {dimension_semantics = [], scalar_prefetch = 0 : i64, scratch_operands = 0 : i64, tpu.core_type = #tpu.core_type<tc>} {
    %c0 = arith.constant 0 : index
    %c0_0 = arith.constant 0 : index
    %0 = vector.load %arg0[%c0, %c0_0] : memref<64x4xf32, #tpu.memory_space<vmem>>, vector<64x4xf32>
    %c0_1 = arith.constant 0 : index
    %c0_2 = arith.constant 0 : index
    %1 = vector.load %arg1[%c0_1, %c0_2] : memref<4x128xf32, #tpu.memory_space<vmem>>, vector<4x128xf32>
    %cst = arith.constant dense<0.000000e+00> : vector<64x128xf32>
    %2 = tpu.matmul %0, %1, %cst {dimension_numbers = #tpu.dot_dimension_numbers<[1], [0], [0], [1], [0, 0, 1, 1], [], []>} : vector<64x4xf32>, vector<4x128xf32>, vector<64x128xf32> -> vector<64x128xf32>
    %c0_3 = arith.constant 0 : index
    %c0_4 = arith.constant 0 : index
    %3 = vector.load %arg3[%c0_3, %c0_4] : memref<1x128xf32, #tpu.memory_space<vmem>>, vector<1x128xf32>
    %4 = vector.broadcast %3 : vector<1x128xf32> to vector<64x128xf32>
    %5 = arith.addf %2, %4 : vector<64x128xf32>
    %c0_5 = arith.constant 0 : index
    %c0_6 = arith.constant 0 : index
    %6 = vector.load %arg2[%c0_5, %c0_6] : memref<32x128xf32, #tpu.memory_space<vmem>>, vector<32x128xf32>
    %7 = vector.extract_strided_slice %5 {offsets = [0, 0], sizes = [8, 128], strides = [1, 1]} : vector<64x128xf32> to vector<8x128xf32>
    %8 = arith.negf %7 : vector<8x128xf32>
    %9 = math.exp %8 : vector<8x128xf32>
    %cst_7 = arith.constant 1.000000e+00 : f32
    %10 = vector.broadcast %cst_7 : f32 to vector<8x128xf32>
    %11 = arith.addf %10, %9 : vector<8x128xf32>
    %12 = arith.divf %10, %11 : vector<8x128xf32>
    %13 = vector.extract_strided_slice %12 {offsets = [0, 0], sizes = [8, 32], strides = [1, 1]} : vector<8x128xf32> to vector<8x32xf32>
    %14 = vector.extract_strided_slice %7 {offsets = [0, 64], sizes = [8, 32], strides = [1, 1]} : vector<8x128xf32> to vector<8x32xf32>
    %15 = math.tanh %14 : vector<8x32xf32>
    %16 = vector.extract_strided_slice %12 {offsets = [0, 96], sizes = [8, 32], strides = [1, 1]} : vector<8x128xf32> to vector<8x32xf32>
    %17 = arith.mulf %13, %15 : vector<8x32xf32>
    %18 = math.tanh %17 : vector<8x32xf32>
    %19 = arith.mulf %16, %18 : vector<8x32xf32>
    %20 = vector.extract_strided_slice %5 {offsets = [8, 0], sizes = [8, 128], strides = [1, 1]} : vector<64x128xf32> to vector<8x128xf32>
    %cst_8 = arith.constant dense<0.000000e+00> : vector<8x128xf32>
    %21 = tpu.matmul %19, %6, %cst_8 {dimension_numbers = #tpu.dot_dimension_numbers<[1], [0], [0], [1], [0, 0, 1, 1], [], []>} : vector<8x32xf32>, vector<32x128xf32>, vector<8x128xf32> -> vector<8x128xf32>
    %22 = arith.addf %20, %21 : vector<8x128xf32>
    %23 = arith.negf %22 : vector<8x128xf32>
    %24 = math.exp %23 : vector<8x128xf32>
    %cst_9 = arith.constant 1.000000e+00 : f32
    %25 = vector.broadcast %cst_9 : f32 to vector<8x128xf32>
    %26 = arith.addf %25, %24 : vector<8x128xf32>
    %27 = arith.divf %25, %26 : vector<8x128xf32>
    %28 = vector.extract_strided_slice %27 {offsets = [0, 0], sizes = [8, 32], strides = [1, 1]} : vector<8x128xf32> to vector<8x32xf32>
    %29 = vector.extract_strided_slice %27 {offsets = [0, 32], sizes = [8, 32], strides = [1, 1]} : vector<8x128xf32> to vector<8x32xf32>
    %30 = vector.extract_strided_slice %22 {offsets = [0, 64], sizes = [8, 32], strides = [1, 1]} : vector<8x128xf32> to vector<8x32xf32>
    %31 = math.tanh %30 : vector<8x32xf32>
    %32 = vector.extract_strided_slice %27 {offsets = [0, 96], sizes = [8, 32], strides = [1, 1]} : vector<8x128xf32> to vector<8x32xf32>
    %33 = arith.mulf %29, %17 : vector<8x32xf32>
    %34 = arith.mulf %28, %31 : vector<8x32xf32>
    %35 = arith.addf %33, %34 : vector<8x32xf32>
    %36 = math.tanh %35 : vector<8x32xf32>
    %37 = arith.mulf %32, %36 : vector<8x32xf32>
    %38 = vector.extract_strided_slice %5 {offsets = [16, 0], sizes = [8, 128], strides = [1, 1]} : vector<64x128xf32> to vector<8x128xf32>
    %cst_10 = arith.constant dense<0.000000e+00> : vector<8x128xf32>
    %39 = tpu.matmul %37, %6, %cst_10 {dimension_numbers = #tpu.dot_dimension_numbers<[1], [0], [0], [1], [0, 0, 1, 1], [], []>} : vector<8x32xf32>, vector<32x128xf32>, vector<8x128xf32> -> vector<8x128xf32>
    %40 = arith.addf %38, %39 : vector<8x128xf32>
    %41 = arith.negf %40 : vector<8x128xf32>
    %42 = math.exp %41 : vector<8x128xf32>
    %cst_11 = arith.constant 1.000000e+00 : f32
    %43 = vector.broadcast %cst_11 : f32 to vector<8x128xf32>
    %44 = arith.addf %43, %42 : vector<8x128xf32>
    %45 = arith.divf %43, %44 : vector<8x128xf32>
    %46 = vector.extract_strided_slice %45 {offsets = [0, 0], sizes = [8, 32], strides = [1, 1]} : vector<8x128xf32> to vector<8x32xf32>
    %47 = vector.extract_strided_slice %45 {offsets = [0, 32], sizes = [8, 32], strides = [1, 1]} : vector<8x128xf32> to vector<8x32xf32>
    %48 = vector.extract_strided_slice %40 {offsets = [0, 64], sizes = [8, 32], strides = [1, 1]} : vector<8x128xf32> to vector<8x32xf32>
    %49 = math.tanh %48 : vector<8x32xf32>
    %50 = vector.extract_strided_slice %45 {offsets = [0, 96], sizes = [8, 32], strides = [1, 1]} : vector<8x128xf32> to vector<8x32xf32>
    %51 = arith.mulf %47, %35 : vector<8x32xf32>
    %52 = arith.mulf %46, %49 : vector<8x32xf32>
    %53 = arith.addf %51, %52 : vector<8x32xf32>
    %54 = math.tanh %53 : vector<8x32xf32>
    %55 = arith.mulf %50, %54 : vector<8x32xf32>
    %56 = vector.extract_strided_slice %5 {offsets = [24, 0], sizes = [8, 128], strides = [1, 1]} : vector<64x128xf32> to vector<8x128xf32>
    %cst_12 = arith.constant dense<0.000000e+00> : vector<8x128xf32>
    %57 = tpu.matmul %55, %6, %cst_12 {dimension_numbers = #tpu.dot_dimension_numbers<[1], [0], [0], [1], [0, 0, 1, 1], [], []>} : vector<8x32xf32>, vector<32x128xf32>, vector<8x128xf32> -> vector<8x128xf32>
    %58 = arith.addf %56, %57 : vector<8x128xf32>
    %59 = arith.negf %58 : vector<8x128xf32>
    %60 = math.exp %59 : vector<8x128xf32>
    %cst_13 = arith.constant 1.000000e+00 : f32
    %61 = vector.broadcast %cst_13 : f32 to vector<8x128xf32>
    %62 = arith.addf %61, %60 : vector<8x128xf32>
    %63 = arith.divf %61, %62 : vector<8x128xf32>
    %64 = vector.extract_strided_slice %63 {offsets = [0, 0], sizes = [8, 32], strides = [1, 1]} : vector<8x128xf32> to vector<8x32xf32>
    %65 = vector.extract_strided_slice %63 {offsets = [0, 32], sizes = [8, 32], strides = [1, 1]} : vector<8x128xf32> to vector<8x32xf32>
    %66 = vector.extract_strided_slice %58 {offsets = [0, 64], sizes = [8, 32], strides = [1, 1]} : vector<8x128xf32> to vector<8x32xf32>
    %67 = math.tanh %66 : vector<8x32xf32>
    %68 = vector.extract_strided_slice %63 {offsets = [0, 96], sizes = [8, 32], strides = [1, 1]} : vector<8x128xf32> to vector<8x32xf32>
    %69 = arith.mulf %65, %53 : vector<8x32xf32>
    %70 = arith.mulf %64, %67 : vector<8x32xf32>
    %71 = arith.addf %69, %70 : vector<8x32xf32>
    %72 = math.tanh %71 : vector<8x32xf32>
    %73 = arith.mulf %68, %72 : vector<8x32xf32>
    %74 = vector.extract_strided_slice %5 {offsets = [32, 0], sizes = [8, 128], strides = [1, 1]} : vector<64x128xf32> to vector<8x128xf32>
    %cst_14 = arith.constant dense<0.000000e+00> : vector<8x128xf32>
    %75 = tpu.matmul %73, %6, %cst_14 {dimension_numbers = #tpu.dot_dimension_numbers<[1], [0], [0], [1], [0, 0, 1, 1], [], []>} : vector<8x32xf32>, vector<32x128xf32>, vector<8x128xf32> -> vector<8x128xf32>
    %76 = arith.addf %74, %75 : vector<8x128xf32>
    %77 = arith.negf %76 : vector<8x128xf32>
    %78 = math.exp %77 : vector<8x128xf32>
    %cst_15 = arith.constant 1.000000e+00 : f32
    %79 = vector.broadcast %cst_15 : f32 to vector<8x128xf32>
    %80 = arith.addf %79, %78 : vector<8x128xf32>
    %81 = arith.divf %79, %80 : vector<8x128xf32>
    %82 = vector.extract_strided_slice %81 {offsets = [0, 0], sizes = [8, 32], strides = [1, 1]} : vector<8x128xf32> to vector<8x32xf32>
    %83 = vector.extract_strided_slice %81 {offsets = [0, 32], sizes = [8, 32], strides = [1, 1]} : vector<8x128xf32> to vector<8x32xf32>
    %84 = vector.extract_strided_slice %76 {offsets = [0, 64], sizes = [8, 32], strides = [1, 1]} : vector<8x128xf32> to vector<8x32xf32>
    %85 = math.tanh %84 : vector<8x32xf32>
    %86 = vector.extract_strided_slice %81 {offsets = [0, 96], sizes = [8, 32], strides = [1, 1]} : vector<8x128xf32> to vector<8x32xf32>
    %87 = arith.mulf %83, %71 : vector<8x32xf32>
    %88 = arith.mulf %82, %85 : vector<8x32xf32>
    %89 = arith.addf %87, %88 : vector<8x32xf32>
    %90 = math.tanh %89 : vector<8x32xf32>
    %91 = arith.mulf %86, %90 : vector<8x32xf32>
    %92 = vector.extract_strided_slice %5 {offsets = [40, 0], sizes = [8, 128], strides = [1, 1]} : vector<64x128xf32> to vector<8x128xf32>
    %cst_16 = arith.constant dense<0.000000e+00> : vector<8x128xf32>
    %93 = tpu.matmul %91, %6, %cst_16 {dimension_numbers = #tpu.dot_dimension_numbers<[1], [0], [0], [1], [0, 0, 1, 1], [], []>} : vector<8x32xf32>, vector<32x128xf32>, vector<8x128xf32> -> vector<8x128xf32>
    %94 = arith.addf %92, %93 : vector<8x128xf32>
    %95 = arith.negf %94 : vector<8x128xf32>
    %96 = math.exp %95 : vector<8x128xf32>
    %cst_17 = arith.constant 1.000000e+00 : f32
    %97 = vector.broadcast %cst_17 : f32 to vector<8x128xf32>
    %98 = arith.addf %97, %96 : vector<8x128xf32>
    %99 = arith.divf %97, %98 : vector<8x128xf32>
    %100 = vector.extract_strided_slice %99 {offsets = [0, 0], sizes = [8, 32], strides = [1, 1]} : vector<8x128xf32> to vector<8x32xf32>
    %101 = vector.extract_strided_slice %99 {offsets = [0, 32], sizes = [8, 32], strides = [1, 1]} : vector<8x128xf32> to vector<8x32xf32>
    %102 = vector.extract_strided_slice %94 {offsets = [0, 64], sizes = [8, 32], strides = [1, 1]} : vector<8x128xf32> to vector<8x32xf32>
    %103 = math.tanh %102 : vector<8x32xf32>
    %104 = vector.extract_strided_slice %99 {offsets = [0, 96], sizes = [8, 32], strides = [1, 1]} : vector<8x128xf32> to vector<8x32xf32>
    %105 = arith.mulf %101, %89 : vector<8x32xf32>
    %106 = arith.mulf %100, %103 : vector<8x32xf32>
    %107 = arith.addf %105, %106 : vector<8x32xf32>
    %108 = math.tanh %107 : vector<8x32xf32>
    %109 = arith.mulf %104, %108 : vector<8x32xf32>
    %110 = vector.extract_strided_slice %5 {offsets = [48, 0], sizes = [8, 128], strides = [1, 1]} : vector<64x128xf32> to vector<8x128xf32>
    %cst_18 = arith.constant dense<0.000000e+00> : vector<8x128xf32>
    %111 = tpu.matmul %109, %6, %cst_18 {dimension_numbers = #tpu.dot_dimension_numbers<[1], [0], [0], [1], [0, 0, 1, 1], [], []>} : vector<8x32xf32>, vector<32x128xf32>, vector<8x128xf32> -> vector<8x128xf32>
    %112 = arith.addf %110, %111 : vector<8x128xf32>
    %113 = arith.negf %112 : vector<8x128xf32>
    %114 = math.exp %113 : vector<8x128xf32>
    %cst_19 = arith.constant 1.000000e+00 : f32
    %115 = vector.broadcast %cst_19 : f32 to vector<8x128xf32>
    %116 = arith.addf %115, %114 : vector<8x128xf32>
    %117 = arith.divf %115, %116 : vector<8x128xf32>
    %118 = vector.extract_strided_slice %117 {offsets = [0, 0], sizes = [8, 32], strides = [1, 1]} : vector<8x128xf32> to vector<8x32xf32>
    %119 = vector.extract_strided_slice %117 {offsets = [0, 32], sizes = [8, 32], strides = [1, 1]} : vector<8x128xf32> to vector<8x32xf32>
    %120 = vector.extract_strided_slice %112 {offsets = [0, 64], sizes = [8, 32], strides = [1, 1]} : vector<8x128xf32> to vector<8x32xf32>
    %121 = math.tanh %120 : vector<8x32xf32>
    %122 = vector.extract_strided_slice %117 {offsets = [0, 96], sizes = [8, 32], strides = [1, 1]} : vector<8x128xf32> to vector<8x32xf32>
    %123 = arith.mulf %119, %107 : vector<8x32xf32>
    %124 = arith.mulf %118, %121 : vector<8x32xf32>
    %125 = arith.addf %123, %124 : vector<8x32xf32>
    %126 = math.tanh %125 : vector<8x32xf32>
    %127 = arith.mulf %122, %126 : vector<8x32xf32>
    %128 = vector.extract_strided_slice %5 {offsets = [56, 0], sizes = [8, 128], strides = [1, 1]} : vector<64x128xf32> to vector<8x128xf32>
    %cst_20 = arith.constant dense<0.000000e+00> : vector<8x128xf32>
    %129 = tpu.matmul %127, %6, %cst_20 {dimension_numbers = #tpu.dot_dimension_numbers<[1], [0], [0], [1], [0, 0, 1, 1], [], []>} : vector<8x32xf32>, vector<32x128xf32>, vector<8x128xf32> -> vector<8x128xf32>
    %130 = arith.addf %128, %129 : vector<8x128xf32>
    %131 = arith.negf %130 : vector<8x128xf32>
    %132 = math.exp %131 : vector<8x128xf32>
    %cst_21 = arith.constant 1.000000e+00 : f32
    %133 = vector.broadcast %cst_21 : f32 to vector<8x128xf32>
    %134 = arith.addf %133, %132 : vector<8x128xf32>
    %135 = arith.divf %133, %134 : vector<8x128xf32>
    %136 = vector.extract_strided_slice %135 {offsets = [0, 0], sizes = [8, 32], strides = [1, 1]} : vector<8x128xf32> to vector<8x32xf32>
    %137 = vector.extract_strided_slice %135 {offsets = [0, 32], sizes = [8, 32], strides = [1, 1]} : vector<8x128xf32> to vector<8x32xf32>
    %138 = vector.extract_strided_slice %130 {offsets = [0, 64], sizes = [8, 32], strides = [1, 1]} : vector<8x128xf32> to vector<8x32xf32>
    %139 = math.tanh %138 : vector<8x32xf32>
    %140 = vector.extract_strided_slice %135 {offsets = [0, 96], sizes = [8, 32], strides = [1, 1]} : vector<8x128xf32> to vector<8x32xf32>
    %141 = arith.mulf %137, %125 : vector<8x32xf32>
    %142 = arith.mulf %136, %139 : vector<8x32xf32>
    %143 = arith.addf %141, %142 : vector<8x32xf32>
    %144 = math.tanh %143 : vector<8x32xf32>
    %145 = arith.mulf %140, %144 : vector<8x32xf32>
    %c0_22 = arith.constant 0 : index
    %c0_23 = arith.constant 0 : index
    %146 = vector.load %arg4[%c0_22, %c0_23] : memref<32x4xf32, #tpu.memory_space<vmem>>, vector<32x4xf32>
    %cst_24 = arith.constant dense<0.000000e+00> : vector<8x4xf32>
    %147 = tpu.matmul %145, %146, %cst_24 {dimension_numbers = #tpu.dot_dimension_numbers<[1], [0], [0], [1], [0, 0, 1, 1], [], []>} : vector<8x32xf32>, vector<32x4xf32>, vector<8x4xf32> -> vector<8x4xf32>
    %c0_25 = arith.constant 0 : index
    %c0_26 = arith.constant 0 : index
    %148 = vector.load %arg5[%c0_25, %c0_26] : memref<1x4xf32, #tpu.memory_space<vmem>>, vector<1x4xf32>
    %149 = vector.broadcast %148 : vector<1x4xf32> to vector<8x4xf32>
    %150 = arith.addf %147, %149 : vector<8x4xf32>
    %c0_27 = arith.constant 0 : index
    %c0_28 = arith.constant 0 : index
    %151 = vector.load %arg6[%c0_27, %c0_28] : memref<8x4xf32, #tpu.memory_space<vmem>>, vector<8x4xf32>
    tpu.vector_store %arg6[%c0_27, %c0_28], %150 {strides = array<i32>} : memref<8x4xf32, #tpu.memory_space<vmem>>, vector<8x4xf32>,
    return
  }
}

</mosaic_0001>

<bundles_post_ra>
// kernel: lstm_forward_pallas.1
= control target key start
LH: loop header
LB: loop body
LE: loop exit
PB: predicated region body
PF: predicated region fallthrough
CT: control target
= control target key end

     0   :  { %vm61_vm0 = vcmask 1043456   ;;  %vm36_vm1 = vcmask 31744   ;;  %s720_s27 = smov 64   ;;  %vm144_vm6 = vcmask 261120   ;;  %s921_s1 = inlined_call_operand.vmem [shape: f32[4,128], index: 1, kind: input, shape index: {}]   ;;  %s922_s0 = inlined_call_operand.vmem [shape: f32[64,4], index: 0, kind: input, shape index: {}]   ;;  %s923_s3 = inlined_call_operand.vmem [shape: f32[1,128], index: 3, kind: input, shape index: {}]   ;;  %s924_s2 = inlined_call_operand.vmem [shape: f32[32,128], index: 2, kind: input, shape index: {}]   ;;  %s925_s4 = inlined_call_operand.vmem [shape: f32[32,4], index: 4, kind: input, shape index: {}]   ;;  %s926_s5 = inlined_call_operand.vmem [shape: f32[1,4], index: 5, kind: input, shape index: {}]   ;;  %s927_s6 = inlined_call_operand.vmem [shape: f32[8,4], index: 6, kind: output, shape index: {}]  }
   0x1   :  { %v31_v0 = vld [vmem:[%s921_s1] sm:$0xf]  ;;  %s721_s1 = smov 32   ;;  %v776_v22 = vld [vmem:[%s924_s2 + $0x18] sm:$0xff]  ;;  %v781_v23 = vld [vmem:[%s924_s2 + $0x10] sm:$0xff] }
   0x2   :  { %v23_v1 = vld [vmem:[%s922_s0] sm:$0xff]  ;;  %625 = vmatpush.msk.msra.mxu0 %vm61_vm0, %v31_v0  ;;  %650 = vmatpush.msk.msra.mxu3 %vm61_vm0, %v31_v0  ;;  %v24_v24 = vld [vmem:[%s922_s0 + $0x8] sm:$0xff]  ;;  %v25_v57 = vld [vmem:[%s922_s0 + $0x10] sm:$0xff] }
   0x3   :  { %626 = vmatmul.msk.f32.vlgmr.msra.gmra.mxu0 %vm36_vm1, %v23_v1  ;;  %v768_v2 = vld [vmem:[%s923_s3] ss:$0 sm:$0xff]  ;;  %s722_s3 = smov 96   ;;  %159 = vmatpush.msra.mxu1 %v776_v22  ;;  %v791_v25 = vld [vmem:[%s924_s2 + $0x8] sm:$0xff] }
   0x4   :  { %226 = vmatpush.msra.mxu2 %v776_v22  ;;  %289 = vmatpush.msrb.mxu3 %v776_v22  ;;  %v800_v26 = vld [vmem:[%s924_s2] sm:$0xff] }
   0x5   :  { %160 = vmatpush.msra.mxu1 %v781_v23 }
   0x6   :  { %227 = vmatpush.msra.mxu2 %v781_v23  ;;  %290 = vmatpush.msrb.mxu3 %v781_v23 }
   0x7   :  { %161 = vmatpush.msra.mxu1 %v791_v25 }
   0x8   :  { %228 = vmatpush.msra.mxu2 %v791_v25  ;;  %291 = vmatpush.msrb.mxu3 %v791_v25 }
   0x9   :  { %162 = vmatpush.msra.mxu1 %v800_v26 }
   0xa   :  { %229 = vmatpush.msra.mxu2 %v800_v26  ;;  %292 = vmatpush.msrb.mxu3 %v800_v26 }
   0xb   :  { %627 = vmatmul.msk.f32.gmra.mxu0 %vm36_vm1, %v24_v24  ;;  %352 = vmatpush.msrb.mxu1 %v776_v22  ;;  %v30_v24 = vld [vmem:[%s922_s0 + $0x38] sm:$0xff] }
   0xc   :  { %415 = vmatpush.msrb.mxu2 %v776_v22 }
   0xd   :  { %353 = vmatpush.msrb.mxu1 %v781_v23 }
   0xe   :  { %416 = vmatpush.msrb.mxu2 %v781_v23 }
   0xf   :  { %354 = vmatpush.msrb.mxu1 %v791_v25 }
  0x10   :  { %417 = vmatpush.msrb.mxu2 %v791_v25 }
  0x11   :  { %355 = vmatpush.msrb.mxu1 %v800_v26 }
  0x12   :  { %418 = vmatpush.msrb.mxu2 %v800_v26 }
  0x13   :  { %628 = vmatmul.msk.f32.gmra.mxu0 %vm36_vm1, %v25_v57 }
  0x80   :  { %v82_v3 = vpop.f32.mrf.mxu0 }
  0x81   :  { %v83_v4 = vadd.f32 %v768_v2, %v82_v3 }
  0x83   :  { %656 = vtanh.f32 %v83_v4  ;;  %v634_v6 = vmul.f32 -1.442695, %v83_v4 }
  0x85   :  { %658 = vpow2.f32 %v634_v6 }
  0x88   :  { %v85_v30 = vpop.f32.mrf.mxu0 }
  0x89   :  { %v657_v5 = vpop.eup %656  ;;  %v86_v31 = vadd.f32 %v768_v2, %v85_v30 }
  0x8a   :  { %131 = vrot.lane.b32.xlu0 %v657_v5, %s720_s27 }
  0x8b   :  { %v659_v7 = vpop.eup %658 }
  0x8c   :  { %v113_v8 = vadd.f32 1.0, %v659_v7 }
  0x8e   :  { %660 = vrcp.f32 %v113_v8  ;;  %v125_v14 = vand.u32 2147483648, %v113_v8  ;;  %vm119_vm3 = vweird.f32 %v113_v8  ;;  %v123_v15 = vand.u32 2147483647, %v113_v8 }
  0x90   :  { %v126_v17 = vor.u32 1.1754944e-38, %v125_v14  ;;  %vm124_vm5 = vcmp.eq.f32.partialorder %v123_v15, 8.507059e+37  ;;  %v88_v59 = vpop.f32.mrf.mxu0 }
  0x91   :  { %v89_v60 = vadd.f32 %v768_v2, %v88_v59 }
  0x94   :  { %v661_v9 = vpop.eup %660 }
  0x95   :  { %v115_v10 = vmul.f32 %v661_v9, %v113_v8  ;;  %vm120_vm2 = vweird.f32 %v661_v9 }
  0x96   :  { %vm121_vm4 = vmor %vm119_vm3, %vm120_vm2 }
  0x97   :  { %v116_v11 = vsub.f32 1.0, %v115_v10 }
  0x99   :  { %v117_v12 = vmul.f32 %v661_v9, %v116_v11 }
  0x9b   :  { %v118_v13 = vadd.f32 %v661_v9, %v117_v12 }
  0x9d   :  { %v122_v16 = vsel %vm121_vm4, %v661_v9, %v118_v13 }
  0x9e   :  { %v127_v19 = vsel %vm124_vm5, %v126_v17, %v122_v16 }
  0xfc   :  { %v132_v18 = vpop.permute.xlu0 %131 }
  0xfd   :  { %v134_v20 = vmul.f32 %v132_v18, %v127_v19 }
  0xff   :  { %662 = vtanh.f32 %v134_v20  ;;  %189 = vrot.lane.b32.xlu2 %v134_v20, %s721_s1  ;;  %v28_v20 = vld [vmem:[%s922_s0 + $0x28] sm:$0xff] }
 0x100   :  { %631 = vmatmul.msk.f32.vlgmr.msra.gmra.mxu3 %vm36_vm1, %v28_v20 }
 0x101   :  { %478 = vmatpush.msra.mxu3 %v776_v22 }
 0x103   :  { %479 = vmatpush.msra.mxu3 %v781_v23 }
 0x105   :  { %v663_v21 = vpop.eup %662  ;;  %480 = vmatpush.msra.mxu3 %v791_v25 }
 0x106   :  { %137 = vrot.lane.b32.xlu0 %v663_v21, %s722_s3  ;;  %v29_v21 = vld [vmem:[%s922_s0 + $0x30] sm:$0xff] }
 0x107   :  { %481 = vmatpush.msra.mxu3 %v800_v26 }
 0x108   :  { %632 = vmatmul.msk.f32.gmra.mxu3 %vm36_vm1, %v29_v21 }
 0x110   :  { %633 = vmatmul.msk.f32.gmra.mxu3 %vm36_vm1, %v30_v24 }
 0x159   :  { %v190_v50 = vpop.permute.xlu2 %189 }
 0x178   :  { %v138_v27 = vpop.permute.xlu0 %137 }
 0x179   :  { %v140_v28 = vmul.f32 %v138_v27, %v127_v19 }
 0x17b   :  { %142 = vrot.lane.b32.xlu1 %v140_v28, %s721_s1 }
 0x1ed   :  { %v143_v29 = vpop.permute.xlu1 %142 }
 0x1ee   :  { %635 = vmatmul.msk.f32.vlgmr.msra.gmra.mxu1 %vm144_vm6, %v143_v29 }
 0x1ef   :  { %541 = vmatpush.msra.mxu1 %v776_v22 }
 0x1f1   :  { %542 = vmatpush.msra.mxu1 %v781_v23  ;;  %v26_v23 = vld [vmem:[%s922_s0 + $0x18] sm:$0xff] }
 0x1f2   :  { %629 = vmatmul.msk.f32.gmra.mxu0 %vm36_vm1, %v26_v23 }
 0x1f3   :  { %543 = vmatpush.msra.mxu1 %v791_v25 }
 0x1f5   :  { %544 = vmatpush.msra.mxu1 %v800_v26  ;;  %v859_v26 = vpop.f32.mrf.mxu3 }
 0x1f6   :  { %v98_v24 = vadd.f32 %v768_v2, %v859_v26 }
 0x1fd   :  { %v861_v28 = vpop.f32.mrf.mxu3 }
 0x205   :  { %v863_v29 = vpop.f32.mrf.mxu3 }
 0x26b   :  { %v164_v32 = vpop.f32.mrf.mxu1 }
 0x26c   :  { %v167_v33 = vadd.f32 %v164_v32, %v86_v31 }
 0x26e   :  { %664 = vtanh.f32 %v167_v33  ;;  %v636_v35 = vmul.f32 -1.442695, %v167_v33 }
 0x26f   :  { %v91_v30 = vpop.f32.mrf.mxu0 }
 0x270   :  { %666 = vpow2.f32 %v636_v35  ;;  %v92_v31 = vadd.f32 %v768_v2, %v91_v30 }
 0x274   :  { %v665_v34 = vpop.eup %664 }
 0x275   :  { %194 = vrot.lane.b32.xlu1 %v665_v34, %s720_s27 }
 0x276   :  { %v667_v36 = vpop.eup %666 }
 0x277   :  { %v171_v37 = vadd.f32 1.0, %v667_v36 }
 0x279   :  { %668 = vrcp.f32 %v171_v37  ;;  %v183_v43 = vand.u32 2147483648, %v171_v37  ;;  %vm177_vm8 = vweird.f32 %v171_v37  ;;  %v181_v44 = vand.u32 2147483647, %v171_v37 }
 0x27b   :  { %v184_v46 = vor.u32 1.1754944e-38, %v183_v43  ;;  %vm182_vm10 = vcmp.eq.f32.partialorder %v181_v44, 8.507059e+37 }
 0x27f   :  { %v669_v38 = vpop.eup %668 }
 0x280   :  { %v173_v39 = vmul.f32 %v669_v38, %v171_v37  ;;  %vm178_vm7 = vweird.f32 %v669_v38 }
 0x281   :  { %vm179_vm9 = vmor %vm177_vm8, %vm178_vm7 }
 0x282   :  { %v174_v40 = vsub.f32 1.0, %v173_v39 }
 0x284   :  { %v175_v41 = vmul.f32 %v669_v38, %v174_v40 }
 0x286   :  { %v176_v42 = vadd.f32 %v669_v38, %v175_v41 }
 0x288   :  { %v180_v45 = vsel %vm179_vm9, %v669_v38, %v176_v42 }
 0x289   :  { %v185_v48 = vsel %vm182_vm10, %v184_v46, %v180_v45 }
 0x28a   :  { %v192_v51 = vmul.f32 %v190_v50, %v185_v48 }
 0x2e7   :  { %v195_v47 = vpop.permute.xlu1 %194 }
 0x2e8   :  { %v197_v49 = vmul.f32 %v195_v47, %v185_v48 }
 0x2ea   :  { %199 = vrot.lane.b32.xlu2 %v197_v49, %s721_s1 }
 0x344   :  { %v200_v52 = vpop.permute.xlu2 %199 }
 0x345   :  { %v202_v53 = vadd.f32 %v200_v52, %v192_v51 }
 0x347   :  { %670 = vtanh.f32 %v202_v53 }
 0x34d   :  { %v671_v54 = vpop.eup %670 }
 0x34e   :  { %205 = vrot.lane.b32.xlu0 %v671_v54, %s720_s27  ;;  %v27_v54 = vld [vmem:[%s922_s0 + $0x20] sm:$0xff] }
 0x34f   :  { %630 = vmatmul.msk.f32.gmra.mxu0 %vm36_vm1, %v27_v54 }
 0x3c0   :  { %v206_v55 = vpop.permute.xlu0 %205 }
 0x3c1   :  { %v208_v56 = vmul.f32 %v206_v55, %v185_v48 }
 0x3c3   :  { %210 = vrot.lane.b32.xlu1 %v208_v56, %s721_s1 }
 0x435   :  { %v211_v58 = vpop.permute.xlu1 %210 }
 0x436   :  { %637 = vmatmul.msk.f32.vlgmr.msra.gmra.mxu2 %vm144_vm6, %v211_v58  ;;  %v94_v58 = vpop.f32.mrf.mxu0 }
 0x437   :  { %v95_v59 = vadd.f32 %v768_v2, %v94_v58 }
 0x4b9   :  { %v231_v61 = vpop.f32.mrf.mxu2 }
 0x4ba   :  { %v234_v62 = vadd.f32 %v231_v61, %v89_v60 }
 0x4bc   :  { %672 = vtanh.f32 %v234_v62  ;;  %v638_v0 = vmul.f32 -1.442695, %v234_v62 }
 0x4be   :  { %674 = vpow2.f32 %v638_v0 }
 0x4c2   :  { %v673_v63 = vpop.eup %672 }
 0x4c3   :  { %257 = vrot.lane.b32.xlu2 %v673_v63, %s720_s27 }
 0x4c4   :  { %v675_v1 = vpop.eup %674 }
 0x4c5   :  { %v238_v3 = vadd.f32 1.0, %v675_v1 }
 0x4c7   :  { %676 = vrcp.f32 %v238_v3  ;;  %v250_v9 = vand.u32 2147483648, %v238_v3  ;;  %vm244_vm12 = vweird.f32 %v238_v3  ;;  %v248_v10 = vand.u32 2147483647, %v238_v3 }
 0x4c9   :  { %v251_v12 = vor.u32 1.1754944e-38, %v250_v9  ;;  %vm249_vm14 = vcmp.eq.f32.partialorder %v248_v10, 8.507059e+37 }
 0x4cd   :  { %v677_v4 = vpop.eup %676 }
 0x4ce   :  { %v240_v5 = vmul.f32 %v677_v4, %v238_v3  ;;  %vm245_vm11 = vweird.f32 %v677_v4 }
 0x4cf   :  { %vm246_vm13 = vmor %vm244_vm12, %vm245_vm11 }
 0x4d0   :  { %v241_v6 = vsub.f32 1.0, %v240_v5 }
 0x4d2   :  { %v242_v7 = vmul.f32 %v677_v4, %v241_v6 }
 0x4d4   :  { %v243_v8 = vadd.f32 %v677_v4, %v242_v7 }
 0x4d6   :  { %v247_v11 = vsel %vm246_vm13, %v677_v4, %v243_v8 }
 0x4d7   :  { %v252_v14 = vsel %vm249_vm14, %v251_v12, %v247_v11 }
 0x4d8   :  { %v255_v16 = vmul.f32 %v252_v14, %v202_v53 }
 0x51d   :  { %v258_v13 = vpop.permute.xlu2 %257 }
 0x51e   :  { %v260_v15 = vmul.f32 %v258_v13, %v252_v14 }
 0x520   :  { %262 = vrot.lane.b32.xlu0 %v260_v15, %s721_s1 }
 0x592   :  { %v263_v17 = vpop.permute.xlu0 %262 }
 0x593   :  { %v265_v18 = vadd.f32 %v263_v17, %v255_v16 }
 0x595   :  { %678 = vtanh.f32 %v265_v18 }
 0x59b   :  { %v679_v19 = vpop.eup %678 }
 0x59c   :  { %268 = vrot.lane.b32.xlu1 %v679_v19, %s720_s27 }
 0x60e   :  { %v269_v27 = vpop.permute.xlu1 %268 }
 0x60f   :  { %v271_v22 = vmul.f32 %v269_v27, %v252_v14 }
 0x611   :  { %273 = vrot.lane.b32.xlu2 %v271_v22, %s721_s1 }
 0x66b   :  { %v274_v25 = vpop.permute.xlu2 %273 }
 0x66c   :  { %639 = vmatmul.msk.f32.vlgmr.msrb.gmra.mxu3 %vm144_vm6, %v274_v25 }
 0x6ef   :  { %v294_v32 = vpop.f32.mrf.mxu3 }
 0x6f0   :  { %v297_v33 = vadd.f32 %v294_v32, %v92_v31 }
 0x6f2   :  { %680 = vtanh.f32 %v297_v33  ;;  %v640_v35 = vmul.f32 -1.442695, %v297_v33 }
 0x6f4   :  { %682 = vpow2.f32 %v640_v35 }
 0x6f8   :  { %v681_v34 = vpop.eup %680 }
 0x6f9   :  { %320 = vrot.lane.b32.xlu0 %v681_v34, %s720_s27 }
 0x6fa   :  { %v683_v36 = vpop.eup %682 }
 0x6fb   :  { %v301_v37 = vadd.f32 1.0, %v683_v36 }
 0x6fd   :  { %684 = vrcp.f32 %v301_v37  ;;  %v313_v43 = vand.u32 2147483648, %v301_v37  ;;  %vm307_vm0 = vweird.f32 %v301_v37  ;;  %v311_v44 = vand.u32 2147483647, %v301_v37 }
 0x6ff   :  { %v314_v46 = vor.u32 1.1754944e-38, %v313_v43  ;;  %vm312_vm3 = vcmp.eq.f32.partialorder %v311_v44, 8.507059e+37 }
 0x703   :  { %v685_v38 = vpop.eup %684 }
 0x704   :  { %v303_v39 = vmul.f32 %v685_v38, %v301_v37  ;;  %vm308_vm15 = vweird.f32 %v685_v38 }
 0x705   :  { %vm309_vm2 = vmor %vm307_vm0, %vm308_vm15 }
 0x706   :  { %v304_v40 = vsub.f32 1.0, %v303_v39 }
 0x708   :  { %v305_v41 = vmul.f32 %v685_v38, %v304_v40 }
 0x70a   :  { %v306_v42 = vadd.f32 %v685_v38, %v305_v41 }
 0x70c   :  { %v310_v45 = vsel %vm309_vm2, %v685_v38, %v306_v42 }
 0x70d   :  { %v315_v48 = vsel %vm312_vm3, %v314_v46, %v310_v45 }
 0x70e   :  { %v318_v50 = vmul.f32 %v315_v48, %v265_v18 }
 0x76b   :  { %v321_v47 = vpop.permute.xlu0 %320 }
 0x76c   :  { %v323_v49 = vmul.f32 %v321_v47, %v315_v48 }
 0x76e   :  { %325 = vrot.lane.b32.xlu1 %v323_v49, %s721_s1 }
 0x7e0   :  { %v326_v51 = vpop.permute.xlu1 %325 }
 0x7e1   :  { %v328_v52 = vadd.f32 %v326_v51, %v318_v50  ;;  %v101_v50 = vadd.f32 %v768_v2, %v861_v28 }
 0x7e3   :  { %686 = vtanh.f32 %v328_v52 }
 0x7e9   :  { %v687_v53 = vpop.eup %686 }
 0x7ea   :  { %331 = vrot.lane.b32.xlu2 %v687_v53, %s720_s27 }
 0x844   :  { %v332_v55 = vpop.permute.xlu2 %331 }
 0x845   :  { %v334_v56 = vmul.f32 %v332_v55, %v315_v48 }
 0x847   :  { %336 = vrot.lane.b32.xlu0 %v334_v56, %s721_s1 }
 0x8b9   :  { %v337_v57 = vpop.permute.xlu0 %336 }
 0x8ba   :  { %641 = vmatmul.msk.f32.vlgmr.msrb.gmra.mxu1 %vm144_vm6, %v337_v57 }
 0x937   :  { %v357_v60 = vpop.f32.mrf.mxu1 }
 0x938   :  { %v360_v61 = vadd.f32 %v357_v60, %v95_v59 }
 0x93a   :  { %688 = vtanh.f32 %v360_v61  ;;  %v642_v63 = vmul.f32 -1.442695, %v360_v61 }
 0x93c   :  { %690 = vpow2.f32 %v642_v63 }
 0x940   :  { %v689_v62 = vpop.eup %688 }
 0x941   :  { %383 = vrot.lane.b32.xlu1 %v689_v62, %s720_s27 }
 0x942   :  { %v691_v0 = vpop.eup %690 }
 0x943   :  { %v364_v1 = vadd.f32 1.0, %v691_v0 }
 0x945   :  { %692 = vrcp.f32 %v364_v1  ;;  %v376_v8 = vand.u32 2147483648, %v364_v1  ;;  %vm370_vm5 = vweird.f32 %v364_v1  ;;  %v374_v9 = vand.u32 2147483647, %v364_v1 }
 0x947   :  { %v377_v11 = vor.u32 1.1754944e-38, %v376_v8  ;;  %vm375_vm8 = vcmp.eq.f32.partialorder %v374_v9, 8.507059e+37 }
 0x94b   :  { %v693_v3 = vpop.eup %692 }
 0x94c   :  { %v366_v4 = vmul.f32 %v693_v3, %v364_v1  ;;  %vm371_vm4 = vweird.f32 %v693_v3 }
 0x94d   :  { %vm372_vm7 = vmor %vm370_vm5, %vm371_vm4 }
 0x94e   :  { %v367_v5 = vsub.f32 1.0, %v366_v4 }
 0x950   :  { %v368_v6 = vmul.f32 %v693_v3, %v367_v5 }
 0x952   :  { %v369_v7 = vadd.f32 %v693_v3, %v368_v6 }
 0x954   :  { %v373_v10 = vsel %vm372_vm7, %v693_v3, %v369_v7 }
 0x955   :  { %v378_v13 = vsel %vm375_vm8, %v377_v11, %v373_v10 }
 0x956   :  { %v381_v15 = vmul.f32 %v378_v13, %v328_v52 }
 0x9b3   :  { %v384_v12 = vpop.permute.xlu1 %383 }
 0x9b4   :  { %v386_v14 = vmul.f32 %v384_v12, %v378_v13  ;;  %v104_v12 = vadd.f32 %v768_v2, %v863_v29 }
 0x9b6   :  { %388 = vrot.lane.b32.xlu2 %v386_v14, %s721_s1 }
 0xa10   :  { %v389_v16 = vpop.permute.xlu2 %388 }
 0xa11   :  { %v391_v17 = vadd.f32 %v389_v16, %v381_v15 }
 0xa13   :  { %694 = vtanh.f32 %v391_v17 }
 0xa19   :  { %v695_v18 = vpop.eup %694 }
 0xa1a   :  { %394 = vrot.lane.b32.xlu0 %v695_v18, %s720_s27 }
 0xa8c   :  { %v395_v19 = vpop.permute.xlu0 %394 }
 0xa8d   :  { %v397_v20 = vmul.f32 %v395_v19, %v378_v13 }
 0xa8f   :  { %399 = vrot.lane.b32.xlu1 %v397_v20, %s721_s1 }
 0xb01   :  { %v400_v21 = vpop.permute.xlu1 %399 }
 0xb02   :  { %643 = vmatmul.msk.f32.vlgmr.msrb.gmra.mxu2 %vm144_vm6, %v400_v21 }
 0xb85   :  { %v420_v27 = vpop.f32.mrf.mxu2 }
 0xb86   :  { %v423_v22 = vadd.f32 %v420_v27, %v98_v24 }
 0xb88   :  { %696 = vtanh.f32 %v423_v22  ;;  %v644_v25 = vmul.f32 -1.442695, %v423_v22 }
 0xb8a   :  { %698 = vpow2.f32 %v644_v25 }
 0xb8e   :  { %v697_v23 = vpop.eup %696 }
 0xb8f   :  { %446 = vrot.lane.b32.xlu2 %v697_v23, %s720_s27 }
 0xb90   :  { %v699_v30 = vpop.eup %698 }
 0xb91   :  { %v427_v31 = vadd.f32 1.0, %v699_v30 }
 0xb93   :  { %700 = vrcp.f32 %v427_v31  ;;  %v439_v37 = vand.u32 2147483648, %v427_v31  ;;  %vm433_vm10 = vweird.f32 %v427_v31  ;;  %v437_v26 = vand.u32 2147483647, %v427_v31 }
 0xb95   :  { %v440_v39 = vor.u32 1.1754944e-38, %v439_v37  ;;  %vm438_vm12 = vcmp.eq.f32.partialorder %v437_v26, 8.507059e+37  ;;  %v589_v37 = vld [vmem:[%s925_s4 + $0x10] sm:$0xff]  ;;  %v588_v26 = vld [vmem:[%s925_s4 + $0x8] sm:$0xff] }
 0xb99   :  { %v701_v32 = vpop.eup %700 }
 0xb9a   :  { %v429_v33 = vmul.f32 %v701_v32, %v427_v31  ;;  %vm434_vm9 = vweird.f32 %v701_v32 }
 0xb9b   :  { %vm435_vm11 = vmor %vm433_vm10, %vm434_vm9 }
 0xb9c   :  { %v430_v34 = vsub.f32 1.0, %v429_v33 }
 0xb9e   :  { %v431_v35 = vmul.f32 %v701_v32, %v430_v34 }
 0xba0   :  { %v432_v36 = vadd.f32 %v701_v32, %v431_v35 }
 0xba2   :  { %v436_v38 = vsel %vm435_vm11, %v701_v32, %v432_v36  ;;  %v590_v36 = vld [vmem:[%s925_s4 + $0x18] sm:$0xff] }
 0xba3   :  { %v441_v41 = vsel %vm438_vm12, %v440_v39, %v436_v38  ;;  %612 = vmatpush.msra.mxu2 %v590_v36  ;;  %v587_v38 = vld [vmem:[%s925_s4] sm:$0xff] }
 0xba4   :  { %v444_v43 = vmul.f32 %v441_v41, %v391_v17 }
 0xba5   :  { %613 = vmatpush.msra.mxu2 %v589_v37 }
 0xba7   :  { %614 = vmatpush.msra.mxu2 %v588_v26 }
 0xba9   :  { %615 = vmatpush.msra.mxu2 %v587_v38 }
 0xbe9   :  { %v447_v40 = vpop.permute.xlu2 %446 }
 0xbea   :  { %v449_v42 = vmul.f32 %v447_v40, %v441_v41 }
 0xbec   :  { %451 = vrot.lane.b32.xlu0 %v449_v42, %s721_s1  ;;  %v655_v42 = vld [vmem:[%s926_s5] ss:$0 sm:$0xff] }
 0xc5e   :  { %v452_v44 = vpop.permute.xlu0 %451 }
 0xc5f   :  { %v454_v45 = vadd.f32 %v452_v44, %v444_v43 }
 0xc61   :  { %702 = vtanh.f32 %v454_v45 }
 0xc67   :  { %v703_v46 = vpop.eup %702 }
 0xc68   :  { %457 = vrot.lane.b32.xlu1 %v703_v46, %s720_s27 }
 0xcda   :  { %v458_v47 = vpop.permute.xlu1 %457 }
 0xcdb   :  { %v460_v48 = vmul.f32 %v458_v47, %v441_v41 }
 0xcdd   :  { %462 = vrot.lane.b32.xlu2 %v460_v48, %s721_s1 }
 0xd37   :  { %v463_v49 = vpop.permute.xlu2 %462 }
 0xd38   :  { %645 = vmatmul.msk.f32.vlgmr.msra.gmra.mxu3 %vm144_vm6, %v463_v49 }
 0xdbb   :  { %v483_v51 = vpop.f32.mrf.mxu3 }
 0xdbc   :  { %v486_v52 = vadd.f32 %v483_v51, %v101_v50 }
 0xdbe   :  { %704 = vtanh.f32 %v486_v52  ;;  %v646_v54 = vmul.f32 -1.442695, %v486_v52 }
 0xdc0   :  { %706 = vpow2.f32 %v646_v54 }
 0xdc4   :  { %v705_v53 = vpop.eup %704 }
 0xdc5   :  { %509 = vrot.lane.b32.xlu0 %v705_v53, %s720_s27 }
 0xdc6   :  { %v707_v55 = vpop.eup %706 }
 0xdc7   :  { %v490_v56 = vadd.f32 1.0, %v707_v55 }
 0xdc9   :  { %708 = vrcp.f32 %v490_v56  ;;  %v502_v62 = vand.u32 2147483648, %v490_v56  ;;  %vm496_vm14 = vweird.f32 %v490_v56  ;;  %v500_v28 = vand.u32 2147483647, %v490_v56 }
 0xdcb   :  { %v503_v0 = vor.u32 1.1754944e-38, %v502_v62  ;;  %vm501_vm0 = vcmp.eq.f32.partialorder %v500_v28, 8.507059e+37 }
 0xdcf   :  { %v709_v57 = vpop.eup %708 }
 0xdd0   :  { %v492_v58 = vmul.f32 %v709_v57, %v490_v56  ;;  %vm497_vm13 = vweird.f32 %v709_v57 }
 0xdd1   :  { %vm498_vm15 = vmor %vm496_vm14, %vm497_vm13 }
 0xdd2   :  { %v493_v59 = vsub.f32 1.0, %v492_v58 }
 0xdd4   :  { %v494_v60 = vmul.f32 %v709_v57, %v493_v59 }
 0xdd6   :  { %v495_v61 = vadd.f32 %v709_v57, %v494_v60 }
 0xdd8   :  { %v499_v63 = vsel %vm498_vm15, %v709_v57, %v495_v61 }
 0xdd9   :  { %v504_v3 = vsel %vm501_vm0, %v503_v0, %v499_v63 }
 0xdda   :  { %v507_v5 = vmul.f32 %v504_v3, %v454_v45 }
 0xe37   :  { %v510_v1 = vpop.permute.xlu0 %509 }
 0xe38   :  { %v512_v4 = vmul.f32 %v510_v1, %v504_v3 }
 0xe3a   :  { %514 = vrot.lane.b32.xlu1 %v512_v4, %s721_s1 }
 0xeac   :  { %v515_v6 = vpop.permute.xlu1 %514 }
 0xead   :  { %v517_v7 = vadd.f32 %v515_v6, %v507_v5 }
 0xeaf   :  { %710 = vtanh.f32 %v517_v7 }
 0xeb5   :  { %v711_v8 = vpop.eup %710 }
 0xeb6   :  { %520 = vrot.lane.b32.xlu2 %v711_v8, %s720_s27 }
 0xf10   :  { %v521_v9 = vpop.permute.xlu2 %520 }
 0xf11   :  { %v523_v10 = vmul.f32 %v521_v9, %v504_v3 }
 0xf13   :  { %525 = vrot.lane.b32.xlu0 %v523_v10, %s721_s1 }
 0xf85   :  { %v526_v11 = vpop.permute.xlu0 %525 }
 0xf86   :  { %647 = vmatmul.msk.f32.vlgmr.msra.gmra.mxu1 %vm144_vm6, %v526_v11 }
0x1003   :  { %v546_v13 = vpop.f32.mrf.mxu1 }
0x1004   :  { %v549_v14 = vadd.f32 %v546_v13, %v104_v12 }
0x1006   :  { %712 = vtanh.f32 %v549_v14  ;;  %v648_v16 = vmul.f32 -1.442695, %v549_v14 }
0x1008   :  { %714 = vpow2.f32 %v648_v16 }
0x100c   :  { %v713_v15 = vpop.eup %712 }
0x100d   :  { %572 = vrot.lane.b32.xlu1 %v713_v15, %s720_s27 }
0x100e   :  { %v715_v17 = vpop.eup %714 }
0x100f   :  { %v553_v18 = vadd.f32 1.0, %v715_v17 }
0x1011   :  { %716 = vrcp.f32 %v553_v18  ;;  %v565_v22 = vand.u32 2147483648, %v553_v18  ;;  %vm559_vm3 = vweird.f32 %v553_v18  ;;  %v563_v2 = vand.u32 2147483647, %v553_v18 }
0x1013   :  { %v566_v23 = vor.u32 1.1754944e-38, %v565_v22  ;;  %vm564_vm5 = vcmp.eq.f32.partialorder %v563_v2, 8.507059e+37 }
0x1017   :  { %v717_v19 = vpop.eup %716 }
0x1018   :  { %v555_v20 = vmul.f32 %v717_v19, %v553_v18  ;;  %vm560_vm2 = vweird.f32 %v717_v19 }
0x1019   :  { %vm561_vm4 = vmor %vm559_vm3, %vm560_vm2 }
0x101a   :  { %v556_v21 = vsub.f32 1.0, %v555_v20 }
0x101c   :  { %v557_v24 = vmul.f32 %v717_v19, %v556_v21 }
0x101e   :  { %v558_v27 = vadd.f32 %v717_v19, %v557_v24 }
0x1020   :  { %v562_v29 = vsel %vm561_vm4, %v717_v19, %v558_v27 }
0x1021   :  { %v567_v30 = vsel %vm564_vm5, %v566_v23, %v562_v29 }
0x1022   :  { %v570_v32 = vmul.f32 %v567_v30, %v517_v7 }
0x107f   :  { %v573_v25 = vpop.permute.xlu1 %572 }
0x1080   :  { %v575_v31 = vmul.f32 %v573_v25, %v567_v30 }
0x1082   :  { %577 = vrot.lane.b32.xlu2 %v575_v31, %s721_s1 }
0x10dc   :  { %v578_v33 = vpop.permute.xlu2 %577 }
0x10dd   :  { %v580_v34 = vadd.f32 %v578_v33, %v570_v32 }
0x10df   :  { %718 = vtanh.f32 %v580_v34 }
0x10e5   :  { %v719_v35 = vpop.eup %718 }
0x10e6   :  { %583 = vrot.lane.b32.xlu0 %v719_v35, %s720_s27 }
0x1158   :  { %v584_v39 = vpop.permute.xlu0 %583 }
0x1159   :  { %v586_v40 = vmul.f32 %v584_v39, %v567_v30 }
0x115b   :  { %596 = vrot.lane.b32.xlu1 %v586_v40, %s721_s1 }
0x11cd   :  { %v597_v41 = vpop.permute.xlu1 %596 }
0x11ce   :  { %649 = vmatmul.msk.f32.vlgmr.msra.gmra.mxu2 %vm144_vm6, %v597_v41 }
0x1251   :  { %v617_v43 = vpop.f32.mrf.mxu2 }
0x1252   :  { %v618_v44 = vadd.f32 %v655_v42, %v617_v43 }
0x1254   :  { %620 = vst.msk [vmem:[%s927_s6] sm:$0xff] %vm36_vm1, %v618_v44 }

</bundles_post_ra>
